<compile_context>
chip_gen: v5e
topology: v5e:2x2
jax: 0.10.0
libtpu: 0.0.40
codegen_flags: <defaults>
</compile_context>

<pallas_src>
import functools

import jax
import jax.numpy as jnp
from jax.experimental import pallas as pl
from jax.experimental.pallas import tpu as pltpu


def _round_up(x, m):
    return ((x + m - 1) // m) * m


def _choose_tile_b(batch, feat, dtype_bytes):
    # 3 inputs x 2 pipeline buffers x tile_b x feat x bytes must stay well under the
    # default scoped-VMEM limit on every generation.
    budget_bytes = 12 * 1024 * 1024
    bytes_per_row = 3 * 2 * feat * dtype_bytes
    max_rows = max(8, budget_bytes // max(bytes_per_row, 1))
    tile = min(1024, max_rows, _round_up(batch, 8))
    return max(8, (tile // 8) * 8)


def _triplet_loss_kernel(a_ref, p_ref, n_ref, out_ref, acc_ref, *,
                         margin, eps, batch, tile_b, inner_steps, needs_mask):
    i = pl.program_id(1)

    @pl.when(i == 0)
    def _zero():
        acc_ref[...] = jnp.zeros_like(acc_ref)

    a = a_ref[...].astype(jnp.float32)
    p = p_ref[...].astype(jnp.float32)
    n = n_ref[...].astype(jnp.float32)

    # PyTorch pairwise_distance: ||x1 - x2 + eps||_2 along the feature dim.
    diff_ap = a - p + eps
    diff_an = a - n + eps
    d_ap = jnp.sqrt(jnp.sum(diff_ap * diff_ap, axis=-1, keepdims=True))  # (tile_b, 1)
    d_an = jnp.sqrt(jnp.sum(diff_an * diff_an, axis=-1, keepdims=True))  # (tile_b, 1)
    per_sample = jnp.maximum(d_ap - d_an + margin, 0.0)                  # (tile_b, 1)

    if needs_mask:
        # Mask rows that fall beyond the real batch (last-block padding and any
        # fully-padded trailing blocks of the outer x inner grid).  Statically
        # removed when the grid tiles the batch exactly.
        block_id = pl.program_id(0) * inner_steps + i
        row_ids = block_id * tile_b + jax.lax.broadcasted_iota(
            jnp.int32, (tile_b, 1), 0)
        per_sample = jnp.where(row_ids < batch, per_sample, 0.0)

    acc_ref[...] += per_sample

    @pl.when(i == inner_steps - 1)
    def _finalize():
        # Single cross-sublane reduce only in the epilogue; broadcast the per-core
        # partial sum into a lane-dense (1, 8, 128) output block (unmasked stores).
        total = jnp.sum(acc_ref[...])
        out_ref[...] = jnp.full(out_ref.shape, total, dtype=jnp.float32)


def triplet_margin_loss(embedded_a, embedded_p, embedded_n,
                        margin=1.0, eps=1e-6, tile_b=None):
    """Pallas equivalent of F.triplet_margin_loss(a, p, n, margin, p=2, eps=1e-6)."""
    assert embedded_a.shape == embedded_p.shape == embedded_n.shape
    assert embedded_a.ndim == 2, "expected (B, D) embeddings"
    batch, feat = embedded_a.shape

    if tile_b is None:
        tile_b = _choose_tile_b(batch, feat, embedded_a.dtype.itemsize)
    total_blocks = pl.cdiv(batch, tile_b)
    # Leading "parallel" axis lets v7x shard the batch across both TensorCores;
    # on v5e/v6e it is just a cheap 2-iteration serial outer loop.
    outer = 2 if total_blocks >= 2 else 1
    inner = pl.cdiv(total_blocks, outer)
    # Mask only needed if some grid block contains rows past the real batch.
    needs_mask = (outer * inner * tile_b) != batch

    def in_map(g, i):
        # Clamp so fully-padded trailing blocks still read a valid (masked-out) tile.
        return (jnp.minimum(g * inner + i, total_blocks - 1), 0)

    kernel = functools.partial(
        _triplet_loss_kernel, margin=float(margin), eps=float(eps),
        batch=batch, tile_b=tile_b, inner_steps=inner, needs_mask=needs_mask)

    in_spec = pl.BlockSpec((tile_b, feat), in_map)
    partials = pl.pallas_call(
        kernel,
        out_shape=jax.ShapeDtypeStruct((outer, 8, 128), jnp.float32),
        grid_spec=pltpu.PrefetchScalarGridSpec(
            num_scalar_prefetch=0,
            grid=(outer, inner),
            in_specs=[in_spec, in_spec, in_spec],
            out_specs=pl.BlockSpec((1, 8, 128), lambda g, i: (g, 0, 0)),
            scratch_shapes=[pltpu.VMEM((tile_b, 1), jnp.float32)],
        ),
        compiler_params=pltpu.CompilerParams(
            dimension_semantics=("parallel", "arbitrary")),
    )(embedded_a, embedded_p, embedded_n)

    # Sum the per-core partial hinge sums; mean over the *global* batch size.
    return jnp.sum(partials[:, 0, 0]) / jnp.float32(batch)


def _reference(a, p, n, margin=1.0, eps=1e-6):
    a = a.astype(jnp.float32)
    p = p.astype(jnp.float32)
    n = n.astype(jnp.float32)
    d_ap = jnp.sqrt(jnp.sum((a - p + eps) ** 2, axis=-1))
    d_an = jnp.sqrt(jnp.sum((a - n + eps) ** 2, axis=-1))
    return jnp.mean(jnp.maximum(d_ap - d_an + margin, 0.0))


if __name__ == "__main__":
    key = jax.random.PRNGKey(0)
    ka, kp, kn = jax.random.split(key, 3)

    # Small shapes consistent with the module's forward: (B, D) embeddings.
    B, D = 8, 32
    embedded_a = jax.random.normal(ka, (B, D), dtype=jnp.float32)
    embedded_p = jax.random.normal(kp, (B, D), dtype=jnp.float32)
    embedded_n = jax.random.normal(kn, (B, D), dtype=jnp.float32)

    loss = triplet_margin_loss(embedded_a, embedded_p, embedded_n, margin=1.0)
    jax.block_until_ready(loss)
    ref = _reference(embedded_a, embedded_p, embedded_n, margin=1.0)
    assert jnp.allclose(loss, ref, atol=1e-5, rtol=1e-5), (loss, ref)

    # Second case: B not a multiple of the tile with a forced small tile, so the
    # multi-block grid, block-index clamping and row-masking paths are exercised.
    B2 = 20
    a2 = jax.random.normal(jax.random.PRNGKey(1), (B2, D), dtype=jnp.float32)
    p2 = jax.random.normal(jax.random.PRNGKey(2), (B2, D), dtype=jnp.float32)
    n2 = jax.random.normal(jax.random.PRNGKey(3), (B2, D), dtype=jnp.float32)
    loss2 = triplet_margin_loss(a2, p2, n2, margin=1.0, tile_b=8)
    jax.block_until_ready(loss2)
    ref2 = _reference(a2, p2, n2, margin=1.0)
    assert jnp.allclose(loss2, ref2, atol=1e-5, rtol=1e-5), (loss2, ref2)

    # Third case: bf16 inputs (kernel upcasts internally) with a mask-free grid.
    B3, D3 = 32, 128
    a3 = jax.random.normal(jax.random.PRNGKey(4), (B3, D3), dtype=jnp.bfloat16)
    p3 = jax.random.normal(jax.random.PRNGKey(5), (B3, D3), dtype=jnp.bfloat16)
    n3 = jax.random.normal(jax.random.PRNGKey(6), (B3, D3), dtype=jnp.bfloat16)
    loss3 = triplet_margin_loss(a3, p3, n3, margin=1.0, tile_b=8)
    jax.block_until_ready(loss3)
    ref3 = _reference(a3, p3, n3, margin=1.0)
    assert jnp.allclose(loss3, ref3, atol=2e-2, rtol=2e-2), (loss3, ref3)

    print("KERNEL_OK")
</pallas_src>

<mosaic_0001>
module attributes {stable_mosaic.version = 11 : i64} {
  func.func @_triplet_loss_kernel(%arg0: i32, %arg1: i32, %arg2: memref<8x32xf32, #tpu.memory_space<vmem>>, %arg3: memref<8x32xf32, #tpu.memory_space<vmem>>, %arg4: memref<8x32xf32, #tpu.memory_space<vmem>>, %arg5: memref<1x8x128xf32, #tpu.memory_space<vmem>>, %arg6: memref<8x1xf32, #tpu.memory_space<vmem>>) attributes {dimension_semantics = [#tpu.dimension_semantics<parallel>, #tpu.dimension_semantics<arbitrary>], iteration_bounds = array<i64: 1, 1>, scalar_prefetch = 0 : i64, scratch_operands = 1 : i64, tpu.core_type = #tpu.core_type<tc>, window_params = [{transform_indices = @transform_0, window_bounds = array<i64: 8, 32>}, {transform_indices = @transform_1, window_bounds = array<i64: 8, 32>}, {transform_indices = @transform_2, window_bounds = array<i64: 8, 32>}, {transform_indices = @transform_3, window_bounds = array<i64: 1, 8, 128>}]} {
    %c0_i32 = arith.constant 0 : i32
    %0 = arith.cmpi eq, %arg1, %c0_i32 : i32
    %1 = arith.extui %0 : i1 to i32
    %c0_i32_0 = arith.constant 0 : i32
    %2 = arith.cmpi ne, %1, %c0_i32_0 : i32
    scf.if %2 {
      %cst_17 = arith.constant 0.000000e+00 : f32
      %31 = vector.broadcast %cst_17 : f32 to vector<8x1xf32>
      %c0_18 = arith.constant 0 : index
      %c0_19 = arith.constant 0 : index
      %32 = vector.load %arg6[%c0_18, %c0_19] : memref<8x1xf32, #tpu.memory_space<vmem>>, vector<8x1xf32>
      tpu.vector_store %arg6[%c0_18, %c0_19], %31 {strides = array<i32>} : memref<8x1xf32, #tpu.memory_space<vmem>>, vector<8x1xf32>,
    } else {
    }
    %c0 = arith.constant 0 : index
    %c0_1 = arith.constant 0 : index
    %3 = vector.load %arg2[%c0, %c0_1] : memref<8x32xf32, #tpu.memory_space<vmem>>, vector<8x32xf32>
    %c0_2 = arith.constant 0 : index
    %c0_3 = arith.constant 0 : index
    %4 = vector.load %arg3[%c0_2, %c0_3] : memref<8x32xf32, #tpu.memory_space<vmem>>, vector<8x32xf32>
    %c0_4 = arith.constant 0 : index
    %c0_5 = arith.constant 0 : index
    %5 = vector.load %arg4[%c0_4, %c0_5] : memref<8x32xf32, #tpu.memory_space<vmem>>, vector<8x32xf32>
    %6 = arith.subf %3, %4 : vector<8x32xf32>
    %cst = arith.constant 9.99999997E-7 : f32
    %7 = vector.broadcast %cst : f32 to vector<8x32xf32>
    %8 = arith.addf %6, %7 : vector<8x32xf32>
    %9 = arith.subf %3, %5 : vector<8x32xf32>
    %cst_6 = arith.constant 9.99999997E-7 : f32
    %10 = vector.broadcast %cst_6 : f32 to vector<8x32xf32>
    %11 = arith.addf %9, %10 : vector<8x32xf32>
    %12 = arith.mulf %8, %8 : vector<8x32xf32>
    %cst_7 = arith.constant dense<0.000000e+00> : vector<8xf32>
    %13 = vector.multi_reduction <add>, %12, %cst_7 [1] : vector<8x32xf32> to vector<8xf32>
    %14 = vector.shape_cast %13 : vector<8xf32> to vector<8x1xf32>
    %15 = math.sqrt %14 : vector<8x1xf32>
    %16 = arith.mulf %11, %11 : vector<8x32xf32>
    %cst_8 = arith.constant dense<0.000000e+00> : vector<8xf32>
    %17 = vector.multi_reduction <add>, %16, %cst_8 [1] : vector<8x32xf32> to vector<8xf32>
    %18 = vector.shape_cast %17 : vector<8xf32> to vector<8x1xf32>
    %19 = math.sqrt %18 : vector<8x1xf32>
    %20 = arith.subf %15, %19 : vector<8x1xf32>
    %cst_9 = arith.constant 1.000000e+00 : f32
    %21 = vector.broadcast %cst_9 : f32 to vector<8x1xf32>
    %22 = arith.addf %20, %21 : vector<8x1xf32>
    %cst_10 = arith.constant 0.000000e+00 : f32
    %23 = vector.broadcast %cst_10 : f32 to vector<8x1xf32>
    %24 = arith.maximumf %22, %23 : vector<8x1xf32>
    %c0_11 = arith.constant 0 : index
    %c0_12 = arith.constant 0 : index
    %25 = vector.load %arg6[%c0_11, %c0_12] : memref<8x1xf32, #tpu.memory_space<vmem>>, vector<8x1xf32>
    %26 = arith.addf %25, %24 : vector<8x1xf32>
    %c0_13 = arith.constant 0 : index
    %c0_14 = arith.constant 0 : index
    %27 = vector.load %arg6[%c0_13, %c0_14] : memref<8x1xf32, #tpu.memory_space<vmem>>, vector<8x1xf32>
    tpu.vector_store %arg6[%c0_13, %c0_14], %26 {strides = array<i32>} : memref<8x1xf32, #tpu.memory_space<vmem>>, vector<8x1xf32>,
    %c0_i32_15 = arith.constant 0 : i32
    %28 = arith.cmpi eq, %arg1, %c0_i32_15 : i32
    %29 = arith.extui %28 : i1 to i32
    %c0_i32_16 = arith.constant 0 : i32
    %30 = arith.cmpi ne, %29, %c0_i32_16 : i32
    scf.if %30 {
      %c0_17 = arith.constant 0 : index
      %c0_18 = arith.constant 0 : index
      %31 = vector.load %arg6[%c0_17, %c0_18] : memref<8x1xf32, #tpu.memory_space<vmem>>, vector<8x1xf32>
      %32 = vector.shape_cast %31 : vector<8x1xf32> to vector<1x8x1xf32>
      %cst_19 = arith.constant dense<0.000000e+00> : vector<1xf32>
      %33 = vector.multi_reduction <add>, %32, %cst_19 [1, 2] : vector<1x8x1xf32> to vector<1xf32>
      %34 = vector.shape_cast %33 : vector<1xf32> to vector<1x1x1xf32>
      %35 = vector.extract %34[0, 0, 0] : f32 from vector<1x1x1xf32>
      %36 = vector.broadcast %35 : f32 to vector<1x8x128xf32>
      %c0_20 = arith.constant 0 : index
      %c0_21 = arith.constant 0 : index
      %c0_22 = arith.constant 0 : index
      %37 = vector.load %arg5[%c0_20, %c0_21, %c0_22] : memref<1x8x128xf32, #tpu.memory_space<vmem>>, vector<1x8x128xf32>
      tpu.vector_store %arg5[%c0_20, %c0_21, %c0_22], %36 {strides = array<i32>} : memref<1x8x128xf32, #tpu.memory_space<vmem>>, vector<1x8x128xf32>,
    } else {
    }
    return
  }
  func.func @transform_0(%arg0: i32, %arg1: i32) -> (i32, i32) {
    %c1_i32 = arith.constant 1 : i32
    %0 = arith.muli %arg0, %c1_i32 : i32
    %1 = arith.addi %0, %arg1 : i32
    %c0_i32 = arith.constant 0 : i32
    %2 = arith.minsi %1, %c0_i32 : i32
    %c0_i32_0 = arith.constant 0 : i32
    %c0_i32_1 = arith.constant 0 : i32
    return %2, %c0_i32_0 : i32, i32
  }
  func.func @transform_1(%arg0: i32, %arg1: i32) -> (i32, i32) {
    %c1_i32 = arith.constant 1 : i32
    %0 = arith.muli %arg0, %c1_i32 : i32
    %1 = arith.addi %0, %arg1 : i32
    %c0_i32 = arith.constant 0 : i32
    %2 = arith.minsi %1, %c0_i32 : i32
    %c0_i32_0 = arith.constant 0 : i32
    %c0_i32_1 = arith.constant 0 : i32
    return %2, %c0_i32_0 : i32, i32
  }
  func.func @transform_2(%arg0: i32, %arg1: i32) -> (i32, i32) {
    %c1_i32 = arith.constant 1 : i32
    %0 = arith.muli %arg0, %c1_i32 : i32
    %1 = arith.addi %0, %arg1 : i32
    %c0_i32 = arith.constant 0 : i32
    %2 = arith.minsi %1, %c0_i32 : i32
    %c0_i32_0 = arith.constant 0 : i32
    %c0_i32_1 = arith.constant 0 : i32
    return %2, %c0_i32_0 : i32, i32
  }
  func.func @transform_3(%arg0: i32, %arg1: i32) -> (i32, i32, i32) {
    %c0_i32 = arith.constant 0 : i32
    %c0_i32_0 = arith.constant 0 : i32
    %c0_i32_1 = arith.constant 0 : i32
    return %arg0, %c0_i32, %c0_i32_0 : i32, i32, i32
  }
}

</mosaic_0001>

<bundles_post_ra>
// kernel: tpu_custom_call.1
= control target key start
LH: loop header
LB: loop body
LE: loop exit
PB: predicated region body
PF: predicated region fallthrough
CT: control target
= control target key end

     0   :  { %8 = vsyncpa [#allocation4], 0  ;;  %s326_s0 = inlined_call_operand.hbm [shape: f32[8,32], index: 0, kind: input, shape index: {}]   ;;  %s327_s1 = inlined_call_operand.hbm [shape: f32[8,32], index: 1, kind: input, shape index: {}]   ;;  %s328_s2 = inlined_call_operand.hbm [shape: f32[8,32], index: 2, kind: input, shape index: {}]   ;;  %s329_s3 = inlined_call_operand.hbm [shape: f32[1,8,128], index: 3, kind: output, shape index: {}]  }
   0x1   :  { %9 = vsyncpa [#allocation7], 0  ;;  %s37_s14 = sshll.u32 %s327_s1, 4  ;;  %s38_s14 = int_to_ptr.hbm [resolvable:$true] %s37_s14 }
   0x2   :  { %10 = vsyncpa [#allocation5], 0  ;;  %s286_s15 = smov [#allocation6]   ;;  %s21_s19 = sshll.u32 %s326_s0, 4  ;;  %s22_s19 = int_to_ptr.hbm [resolvable:$true] %s21_s19 }
   0x3   :  { %s39_s16 = sshll.u32 %s286_s15, 4  ;;  %s287_s20 = smov [#allocation3]   ;;  %s40_s16 = int_to_ptr.vmem [resolvable:$true] %s39_s16 }
   0x4   :  { %42 = dma.hbm_to_vmem [thread:$0]  %s38_s14, 128, %s40_s16, [#allocation7]  }
   0x5   :  { %s23_s21 = sshll.u32 %s287_s20, 4  ;;  %s53_s24 = sshll.u32 %s328_s2, 4  ;;  %s24_s21 = int_to_ptr.vmem [resolvable:$true] %s23_s21  ;;  %s54_s24 = int_to_ptr.hbm [resolvable:$true] %s53_s24 }
   0x6   :  { %26 = dma.hbm_to_vmem [thread:$0]  %s22_s19, 128, %s24_s21, [#allocation4]  }
   0x7   :  { %s288_s1 = smov [#allocation8]  }
   0x8   :  { %s55_s25 = sshll.u32 %s288_s1, 4  ;;  %s56_s25 = int_to_ptr.vmem [resolvable:$true] %s55_s25 }
   0x9   :  { %58 = dma.hbm_to_vmem [thread:$0]  %s54_s24, 128, %s56_s25, [#allocation7]  }
   0xa   :  { %280 = dma.done.wait [#allocation4], 128  }
   0xb   :  { %281 = vsyncadd [#allocation4], 4294967168 }
   0xc   :  { %282 = dma.done.wait [#allocation7], 256  }
   0xd   :  { %283 = vsyncadd [#allocation7], 4294967040  ;;  %v86_v0 = vld [vmem:[#allocation3] sm:$0xff]  ;;  %v87_v1 = vld [vmem:[#allocation6] sm:$0xff]  ;;  %vm94_vm0 = vcmask 261120   ;;  %vm84_vm1 = vcmask 7168  }
   0xe   :  { %v88_v2 = vld [vmem:[#allocation8] sm:$0xff]  ;;  %v89_v3 = vsub.f32 %v86_v0, %v87_v1  ;;  %v289_v11 = vmov 0.0   ;;  %s290_s0 = smov [#allocation9]   ;;  %s156_s28 = sshll.u32 %s329_s3, 4  ;;  %s157_s28 = int_to_ptr.hbm [resolvable:$true] %s156_s28 }
   0xf   :  { %v91_v4 = vsub.f32 %v86_v0, %v88_v2  ;;  %85 = vst.msk [vmem:[#allocation2] sm:$0xff] %vm84_vm1, %v289_v11  ;;  %s154_s2 = sshll.u32 %s290_s0, 4  ;;  %s155_s2 = int_to_ptr.vmem [resolvable:$true] %s154_s2 }
  0x10   :  { %v90_v5 = vadd.f32 1e-06, %v89_v3 }
  0x11   :  { %v92_v7 = vadd.f32 1e-06, %v91_v4 }
  0x12   :  { %v93_v6 = vmul.f32 %v90_v5, %v90_v5 }
  0x13   :  { %v110_v9 = vmul.f32 %v92_v7, %v92_v7 }
  0x14   :  { %v95_v8 = vsel %vm94_vm0, %v93_v6, 0.0 }
  0x15   :  { %96 = vadd.xlane.f32.xlu0 %v95_v8  ;;  %v111_v10 = vsel %vm94_vm0, %v110_v9, 0.0 }
  0x16   :  { %v129_v36 = vld [vmem:[#allocation2] sm:$0xff] }
  0x1d   :  { %112 = vadd.xlane.f32.xlu0 %v111_v10 }
  0x88   :  { %v97_v12 = vpop.xlane.xlu0 %96 }
  0x89   :  { %180 = vrsqrt.f32 %v97_v12  ;;  %vm105_vm2 = vcmp.eq.f32.partialorder %v97_v12, inf  ;;  %v108_v29 = vand.u32 2147483648, %v97_v12  ;;  %vm107_vm4 = vcmp.eq.f32.partialorder %v97_v12, 0.0 }
  0x8f   :  { %v181_v13 = vpop.eup %180 }
  0x90   :  { %v99_v14 = vmul.f32 %v181_v13, %v97_v12  ;;  %v113_v15 = vpop.xlane.xlu0 %112 }
  0x91   :  { %182 = vrsqrt.f32 %v113_v15  ;;  %vm121_vm3 = vcmp.eq.f32.partialorder %v113_v15, inf  ;;  %v124_v30 = vand.u32 2147483648, %v113_v15  ;;  %vm123_vm5 = vcmp.eq.f32.partialorder %v113_v15, 0.0 }
  0x92   :  { %v100_v16 = vmul.f32 %v181_v13, %v99_v14 }
  0x94   :  { %v101_v17 = vmul.f32 0.5, %v100_v16 }
  0x96   :  { %v102_v18 = vsub.f32 1.5, %v101_v17 }
  0x97   :  { %v183_v19 = vpop.eup %182 }
  0x98   :  { %v115_v20 = vmul.f32 %v183_v19, %v113_v15  ;;  %v103_v21 = vmul.f32 %v181_v13, %v102_v18 }
  0x9a   :  { %v116_v22 = vmul.f32 %v183_v19, %v115_v20  ;;  %v104_v24 = vmul.f32 %v103_v21, %v97_v12 }
  0x9c   :  { %v117_v23 = vmul.f32 0.5, %v116_v22  ;;  %v106_v27 = vsel %vm105_vm2, %v97_v12, %v104_v24 }
  0x9d   :  { %v109_v32 = vsel %vm107_vm4, %v108_v29, %v106_v27 }
  0x9e   :  { %v118_v25 = vsub.f32 1.5, %v117_v23 }
  0xa0   :  { %v119_v26 = vmul.f32 %v183_v19, %v118_v25 }
  0xa2   :  { %v120_v28 = vmul.f32 %v119_v26, %v113_v15 }
  0xa4   :  { %v122_v31 = vsel %vm121_vm3, %v113_v15, %v120_v28 }
  0xa5   :  { %v125_v33 = vsel %vm123_vm5, %v124_v30, %v122_v31 }
  0xa6   :  { %v126_v34 = vsub.f32 %v109_v32, %v125_v33 }
  0xa8   :  { %v127_v35 = vadd.f32 1.0, %v126_v34 }
  0xaa   :  { %v128_v37 = vmax.f32 %v127_v35, 0.0 }
  0xac   :  { %v130_v38 = vadd.f32 %v129_v36, %v128_v37 }
  0xae   :  { %132 = vst.msk [vmem:[#allocation2] sm:$0xff] %vm84_vm1, %v130_v38 }
  0xb5   :  { %v136_v39 = vld [vmem:[#allocation2] sm:$0xff] }
  0xb6   :  { %v137_v40 = vsel %vm84_vm1, %v136_v39, 0.0 }
  0xb7   :  { %138 = vadd.xlane.f32.xlu1 %v137_v40 }
 0x12a   :  { %v139_v41 = vpop.xlane.xlu1 %138 }
 0x12b   :  { %v140_v42 = vrot.slane %v139_v41, 4 }
 0x12d   :  { %v141_v43 = vadd.f32 %v140_v42, %v139_v41 }
 0x12f   :  { %v142_v44 = vrot.slane %v141_v43, 2 }
 0x131   :  { %v143_v45 = vadd.f32 %v142_v44, %v141_v43 }
 0x133   :  { %v144_v46 = vrot.slane %v143_v45, 1 }
 0x135   :  { %v145_v47 = vadd.f32 %v144_v46, %v143_v45 }
 0x137   :  { %173 = vpush %v145_v47 }
 0x168   :  { %s174_s29 = spop %173 }
 0x169   :  { %v147_v48 = vstv %s174_s29 }
 0x16a   :  { %148 = vst [vmem:[#allocation9] sm:$0xff] %v147_v48 }
 0x16b   :  { %159 = dma.vmem_to_hbm [thread:$0]  %s155_s2, 128, %s157_s28, [#allocation5]  }
 0x16c   :  { %284 = dma.done.wait [#allocation5], 128  }
 0x16d   :  { %285 = vsyncadd [#allocation5], 4294967168 }
 0x16e   :  { %164 = vsyncpa [#allocation4], 1 }
 0x16f   :  { %165 = vsyncpa [#allocation7], 1 }
 0x170   :  { %166 = vsyncpa [#allocation5], 1 }

</bundles_post_ra>
